<compile_context>
chip_gen: v6e
topology: v6e:2x2x1
jax: 0.10.0
libtpu: 0.0.40
codegen_flags: <defaults>
</compile_context>

<pallas_src>
import functools

import jax
import jax.numpy as jnp
from jax.experimental import pallas as pl
from jax.experimental.pallas import tpu as pltpu


def _weighted_nll_kernel(pred_ref, tgt_ref, w_ref, out_ref,
                         *, n_total, tile_rows, needs_mask, inv_n):
    i = pl.program_id(0)

    @pl.when(i == 0)
    def _init():
        out_ref[...] = jnp.zeros_like(out_ref)

    pred = pred_ref[...].astype(jnp.float32)    # (TN, C) upcast AFTER the load
    tgt = tgt_ref[...]                          # (TN, 1) int32 class indices
    w = w_ref[...].astype(jnp.float32)          # (TN, 1) per-sample weights

    tn, c = pred.shape
    class_ids = jax.lax.broadcasted_iota(jnp.int32, (tn, c), 1)   # lane-axis iota
    picked = jnp.where(class_ids == tgt, pred, 0.0)               # (TN, C) select
    nll = -jnp.sum(picked, axis=-1, keepdims=True)                # (TN, 1)
    contrib = nll * w                                             # (TN, 1)

    if needs_mask:
        # Mask rows of the (padded) last tile that lie past the real batch.
        row_ids = i * tile_rows + jax.lax.broadcasted_iota(jnp.int32, (tn, 1), 0)
        contrib = jnp.where(row_ids < n_total, contrib, 0.0)

    out_ref[...] += jnp.sum(contrib, keepdims=True)               # (1, 1) resident

    @pl.when(i == pl.num_programs(0) - 1)
    def _finalize():
        # Single divide by the *global* N, done once at the end.
        out_ref[...] = out_ref[...] * inv_n


def _pick_tile_rows(n, c, itemsize):
    # ~8 MiB per pred tile; x2 double-buffering => ~16 MiB for pred plus a few
    # hundred KiB for the lane-padded (TN,1) target/weight tiles, comfortably
    # inside the default scoped VMEM limit on v5e/v6e/v7x.
    budget = 8 * 1024 * 1024
    rows = budget // max(1, c * itemsize)
    rows = int(max(8, min(rows, 1024)))
    rows = (rows // 8) * 8
    if rows >= n:
        return n
    return rows


def weighted_nll_loss(pred, target, weights, *, tile_rows=None):
    """pred: (N, C) log-probs (f32 or bf16), target: (N,) ints, weights: (N,)
    floats -> scalar f32 = mean_i( -pred[i, target[i]] * weights[i] )."""
    n, c = pred.shape
    if tile_rows is None:
        tile_rows = _pick_tile_rows(n, c, pred.dtype.itemsize)
    tile_rows = min(tile_rows, n)
    if tile_rows < n and tile_rows % 8 != 0:
        raise ValueError("tile_rows must be a multiple of 8 when tiling the batch")

    num_tiles = pl.cdiv(n, tile_rows)
    needs_mask = (n % tile_rows) != 0

    target2d = target.astype(jnp.int32).reshape(n, 1)
    weights2d = weights.reshape(n, 1)

    kernel = functools.partial(
        _weighted_nll_kernel,
        n_total=n, tile_rows=tile_rows, needs_mask=needs_mask, inv_n=1.0 / n)

    out = pl.pallas_call(
        kernel,
        out_shape=jax.ShapeDtypeStruct((1, 1), jnp.float32),
        grid=(num_tiles,),
        in_specs=[
            pl.BlockSpec((tile_rows, c), lambda i: (i, 0)),   # pred, native dtype
            pl.BlockSpec((tile_rows, 1), lambda i: (i, 0)),   # target
            pl.BlockSpec((tile_rows, 1), lambda i: (i, 0)),   # weights
        ],
        out_specs=pl.BlockSpec((1, 1), lambda i: (0, 0)),     # resident accumulator
        compiler_params=pltpu.CompilerParams(
            dimension_semantics=("arbitrary",)),
    )(pred, target2d, weights2d)
    return out[0, 0]


if __name__ == "__main__":
    key = jax.random.PRNGKey(0)
    k1, k2, k3 = jax.random.split(key, 3)

    # Small shapes consistent with the classifier head (batch N, classes C).
    N, C = 8, 16
    logits = jax.random.normal(k1, (N, C), dtype=jnp.float32)
    pred = jax.nn.log_softmax(logits, axis=-1)            # log-probs (NLLLoss input)
    target = jax.random.randint(k2, (N,), 0, C, dtype=jnp.int32)
    weights = jax.random.uniform(k3, (N,), dtype=jnp.float32)

    loss = weighted_nll_loss(pred, target, weights)
    jax.block_until_ready(loss)

    ref = jnp.mean(-pred[jnp.arange(N), target] * weights)
    assert jnp.allclose(loss, ref, rtol=1e-5, atol=1e-6), (loss, ref)

    # Second check: multi-tile path with a ragged tail (N % tile_rows != 0) and
    # bf16 pred, exercising tiling + tail masking + in-kernel upcast.
    N2, C2 = 200, 16
    k4, k5, k6 = jax.random.split(k1, 3)
    logits2 = jax.random.normal(k4, (N2, C2), dtype=jnp.float32)
    pred2 = jax.nn.log_softmax(logits2, axis=-1).astype(jnp.bfloat16)
    target2 = jax.random.randint(k5, (N2,), 0, C2, dtype=jnp.int32)
    weights2 = jax.random.uniform(k6, (N2,), dtype=jnp.float32)

    loss2 = weighted_nll_loss(pred2, target2, weights2, tile_rows=64)
    jax.block_until_ready(loss2)

    ref2 = jnp.mean(-pred2.astype(jnp.float32)[jnp.arange(N2), target2] * weights2)
    assert jnp.allclose(loss2, ref2, rtol=1e-5, atol=1e-6), (loss2, ref2)

    print("KERNEL_OK")
</pallas_src>

<mosaic_0001>
module attributes {stable_mosaic.version = 11 : i64} {
  func.func @_weighted_nll_kernel(%arg0: i32, %arg1: memref<8x16xf32, #tpu.memory_space<vmem>>, %arg2: memref<8x1xi32, #tpu.memory_space<vmem>>, %arg3: memref<8x1xf32, #tpu.memory_space<vmem>>, %arg4: memref<1x1xf32, #tpu.memory_space<vmem>>) attributes {dimension_semantics = [#tpu.dimension_semantics<arbitrary>], iteration_bounds = array<i64: 1>, scalar_prefetch = 0 : i64, scratch_operands = 0 : i64, tpu.core_type = #tpu.core_type<tc>, window_params = [{transform_indices = @transform_0, window_bounds = array<i64: 8, 16>}, {transform_indices = @transform_1, window_bounds = array<i64: 8, 1>}, {transform_indices = @transform_2, window_bounds = array<i64: 8, 1>}, {pipeline_mode = #tpu.pipeline_mode<synchronous>, transform_indices = @transform_3, window_bounds = array<i64: 1, 1>}]} {
    %c0_i32 = arith.constant 0 : i32
    %0 = arith.cmpi eq, %arg0, %c0_i32 : i32
    %1 = arith.extui %0 : i1 to i32
    %c0_i32_0 = arith.constant 0 : i32
    %2 = arith.cmpi ne, %1, %c0_i32_0 : i32
    scf.if %2 {
      %cst_15 = arith.constant 0.000000e+00 : f32
      %27 = vector.broadcast %cst_15 : f32 to vector<1x1xf32>
      %c0_16 = arith.constant 0 : index
      %c0_17 = arith.constant 0 : index
      %28 = vector.load %arg4[%c0_16, %c0_17] : memref<1x1xf32, #tpu.memory_space<vmem>>, vector<1x1xf32>
      tpu.vector_store %arg4[%c0_16, %c0_17], %27 {strides = array<i32>} : memref<1x1xf32, #tpu.memory_space<vmem>>, vector<1x1xf32>,
    } else {
    }
    %c0 = arith.constant 0 : index
    %c0_1 = arith.constant 0 : index
    %3 = vector.load %arg1[%c0, %c0_1] : memref<8x16xf32, #tpu.memory_space<vmem>>, vector<8x16xf32>
    %c0_2 = arith.constant 0 : index
    %c0_3 = arith.constant 0 : index
    %4 = vector.load %arg2[%c0_2, %c0_3] : memref<8x1xi32, #tpu.memory_space<vmem>>, vector<8x1xi32>
    %c0_4 = arith.constant 0 : index
    %c0_5 = arith.constant 0 : index
    %5 = vector.load %arg3[%c0_4, %c0_5] : memref<8x1xf32, #tpu.memory_space<vmem>>, vector<8x1xf32>
    %6 = tpu.iota {dimensions = array<i32: 1>} : vector<8x16xi32>
    %7 = vector.broadcast %4 : vector<8x1xi32> to vector<8x16xi32>
    %8 = arith.cmpi eq, %6, %7 : vector<8x16xi32>
    %cst = arith.constant 0.000000e+00 : f32
    %9 = vector.broadcast %cst : f32 to vector<8x16xf32>
    %10 = arith.select %8, %3, %9 : vector<8x16xi1>, vector<8x16xf32>
    %cst_6 = arith.constant dense<0.000000e+00> : vector<8xf32>
    %11 = vector.multi_reduction <add>, %10, %cst_6 [1] : vector<8x16xf32> to vector<8xf32>
    %12 = vector.shape_cast %11 : vector<8xf32> to vector<8x1xf32>
    %cst_7 = arith.constant 0.000000e+00 : f32
    %13 = vector.broadcast %cst_7 : f32 to vector<8x1xf32>
    %14 = arith.subf %13, %12 : vector<8x1xf32>
    %15 = arith.mulf %14, %5 : vector<8x1xf32>
    %c0_8 = arith.constant 0 : index
    %c0_9 = arith.constant 0 : index
    %16 = vector.load %arg4[%c0_8, %c0_9] : memref<1x1xf32, #tpu.memory_space<vmem>>, vector<1x1xf32>
    %17 = vector.shape_cast %15 : vector<8x1xf32> to vector<1x8x1xf32>
    %cst_10 = arith.constant dense<0.000000e+00> : vector<1xf32>
    %18 = vector.multi_reduction <add>, %17, %cst_10 [1, 2] : vector<1x8x1xf32> to vector<1xf32>
    %19 = vector.shape_cast %18 : vector<1xf32> to vector<1x1x1xf32>
    %20 = vector.extract %19[0, 0, 0] : f32 from vector<1x1x1xf32>
    %21 = vector.broadcast %20 : f32 to vector<1x1xf32>
    %22 = arith.addf %16, %21 : vector<1x1xf32>
    %c0_11 = arith.constant 0 : index
    %c0_12 = arith.constant 0 : index
    %23 = vector.load %arg4[%c0_11, %c0_12] : memref<1x1xf32, #tpu.memory_space<vmem>>, vector<1x1xf32>
    tpu.vector_store %arg4[%c0_11, %c0_12], %22 {strides = array<i32>} : memref<1x1xf32, #tpu.memory_space<vmem>>, vector<1x1xf32>,
    %c0_i32_13 = arith.constant 0 : i32
    %24 = arith.cmpi eq, %arg0, %c0_i32_13 : i32
    %25 = arith.extui %24 : i1 to i32
    %c0_i32_14 = arith.constant 0 : i32
    %26 = arith.cmpi ne, %25, %c0_i32_14 : i32
    scf.if %26 {
      %c0_15 = arith.constant 0 : index
      %c0_16 = arith.constant 0 : index
      %27 = vector.load %arg4[%c0_15, %c0_16] : memref<1x1xf32, #tpu.memory_space<vmem>>, vector<1x1xf32>
      %cst_17 = arith.constant 1.250000e-01 : f32
      %28 = vector.broadcast %cst_17 : f32 to vector<1x1xf32>
      %29 = arith.mulf %27, %28 : vector<1x1xf32>
      %c0_18 = arith.constant 0 : index
      %c0_19 = arith.constant 0 : index
      %30 = vector.load %arg4[%c0_18, %c0_19] : memref<1x1xf32, #tpu.memory_space<vmem>>, vector<1x1xf32>
      tpu.vector_store %arg4[%c0_18, %c0_19], %29 {strides = array<i32>} : memref<1x1xf32, #tpu.memory_space<vmem>>, vector<1x1xf32>,
    } else {
    }
    return
  }
  func.func @transform_0(%arg0: i32) -> (i32, i32) {
    %c0_i32 = arith.constant 0 : i32
    %c0_i32_0 = arith.constant 0 : i32
    return %arg0, %c0_i32 : i32, i32
  }
  func.func @transform_1(%arg0: i32) -> (i32, i32) {
    %c0_i32 = arith.constant 0 : i32
    %c0_i32_0 = arith.constant 0 : i32
    return %arg0, %c0_i32 : i32, i32
  }
  func.func @transform_2(%arg0: i32) -> (i32, i32) {
    %c0_i32 = arith.constant 0 : i32
    %c0_i32_0 = arith.constant 0 : i32
    return %arg0, %c0_i32 : i32, i32
  }
  func.func @transform_3(%arg0: i32) -> (i32, i32) {
    %c0_i32 = arith.constant 0 : i32
    %c0_i32_0 = arith.constant 0 : i32
    %c0_i32_1 = arith.constant 0 : i32
    return %c0_i32, %c0_i32_0 : i32, i32
  }
}

</mosaic_0001>

<bundles_post_ra>
// kernel: tpu_custom_call.1
= control target key start
LH: loop header
LB: loop body
LE: loop exit
PB: predicated region body
PF: predicated region fallthrough
CT: control target
= control target key end

     0   :  { %s139_s0 = inlined_call_operand.vmem [shape: f32[8,16], index: 0, kind: input, shape index: {}]   ;;  %s140_s1 = inlined_call_operand.vmem [shape: s32[8,1], index: 1, kind: input, shape index: {}]   ;;  %s141_s2 = inlined_call_operand.vmem [shape: f32[8,1], index: 2, kind: input, shape index: {}]   ;;  %s142_s3 = inlined_call_operand.hbm [shape: f32[1,1], index: 3, kind: output, shape index: {}]  }
   0x1   :  { %v22_v0 = vld [vmem:[%s140_s1] sm:$0xff] }
   0x2   :  { %8 = vsyncpa [#allocation3], 0  ;;  %v101_v1 = vmov 0   ;;  %v24_v2 = vlaneseq  ;;  %v21_v4 = vld [vmem:[%s139_s0] sm:$0xff]  ;;  %vm31_vm0 = vcmask 130048   ;;  %vm38_vm2 = vcmask 7168  }
   0x3   :  { %78 = vset.pattern.permute.xlu0 %v101_v1  ;;  %v23_v9 = vld [vmem:[%s141_s2] sm:$0xff]  ;;  %vm19_vm3 = vcmask 0   ;;  %v102_v13 = vmov 0.0   ;;  %s103_s1 = smov [#allocation2]  }
   0x4   :  { %27 = vperm.xlu0 %78, %v22_v0   ;;  %v25_v3 = vand.u32 127, %v24_v2  ;;  %20 = vst.msk [vmem:[#allocation2] sm:$0x1] %vm19_vm3, %v102_v13  ;;  %s65_s2 = sshll.u32 %s103_s1, 4  ;;  %s66_s2 = int_to_ptr.vmem [resolvable:$true] %s65_s2 }
   0x5   :  { %s79_s18 = scalar_lea.vmem %s66_s2, 16  ;;  %s83_s19 = scalar_lea.vmem %s66_s2, 32 }
   0x6   :  { %p80_p0 = scmp.ne.s32.totalorder %s66_s2, %s79_s18  ;;  %p84_p1 = scmp.lt.s32.totalorder %s66_s2, %s66_s2 }
   0x7   :  { %p85_p2 = scmp.lt.s32.totalorder %s83_s19, %s79_s18 }
   0x9   :  { %p86_p3 = por %p85_p2, %p84_p1 }
   0xb   :  { %v37_v21 = vld [vmem:[#allocation2] sm:$0x1]  ;;  %p87_p4 = pnand %p86_p3, %p80_p0 }
  0x7f   :  { %v28_v5 = vpop.permute.xlu0 %27 }
  0x80   :  { %vm29_vm1 = vcmp.eq.s32.totalorder %v25_v3, %v28_v5 }
  0x81   :  { %v30_v6 = vsel %vm29_vm1, %v21_v4, 0.0 }
  0x82   :  { %v32_v7 = vsel %vm31_vm0, %v30_v6, 0.0 }
  0x83   :  { %33 = vadd.xlane.f32.xlu0 %v32_v7 }
 0x10c   :  { %v34_v8 = vpop.xlane.xlu0 %33 }
 0x10d   :  { %v35_v10 = vsub.f32 0.0, %v34_v8 }
 0x10f   :  { %v36_v11 = vmul.f32 %v35_v10, %v23_v9 }
 0x111   :  { %v39_v12 = vsel %vm38_vm2, %v36_v11, 0.0 }
 0x112   :  { %40 = vadd.xlane.f32.xlu1 %v39_v12 }
 0x19b   :  { %v41_v14 = vpop.xlane.xlu1 %40 }
 0x19c   :  { %v42_v15 = vrot.slane %v41_v14, 4 }
 0x19e   :  { %v43_v16 = vadd.f32 %v42_v15, %v41_v14 }
 0x1a0   :  { %v44_v17 = vrot.slane %v43_v16, 2 }
 0x1a2   :  { %v45_v18 = vadd.f32 %v44_v17, %v43_v16 }
 0x1a4   :  { %v46_v19 = vrot.slane %v45_v18, 1 }
 0x1a6   :  { %v47_v20 = vadd.f32 %v46_v19, %v45_v18 }
 0x1a8   :  { %73 = vpush %v47_v20 }
 0x1d9   :  { %s74_s0 = spop %73 }
 0x1da   :  { %v49_v22 = vstv %s74_s0 }
 0x1db   :  { %v50_v23 = vadd.f32 %v49_v22, %v37_v21 }
 0x1dd   :  { %52 = vst.msk [vmem:[#allocation2] sm:$0x1] %vm19_vm3, %v50_v23 }
 0x1e4   :  { %v56_v24 = vld [vmem:[#allocation2] sm:$0x1] }
 0x1e5   :  { %v57_v25 = vmul.f32 0.125, %v56_v24 }
 0x1e7   :  { %58 = vst.msk [vmem:[#allocation2] sm:$0x1] %vm19_vm3, %v57_v25 }
 0x1e8   :  { %90 = shalt.err (!%p87_p4)
}
 0x1e9   :  { %68 = dma.vmem_to_hbm [thread:$0]  %s66_s2, 16, %s142_s3, [#allocation3]  }
 0x1ea   :  { %99 = dma.done.wait [#allocation3], 16  }
 0x1eb   :  { %100 = vsyncadd [#allocation3], 4294967280 }
 0x1ec   :  { %72 = vsyncpa [#allocation3], 1 }

</bundles_post_ra>
